<compile_context>
chip_gen: v7x
topology: tpu7x:2x2x1
jax: 0.10.0
libtpu: 0.0.40
codegen_flags: <defaults>
</compile_context>

<pallas_src>
import jax
import jax.numpy as jnp
from jax.experimental import pallas as pl
from jax.experimental.pallas import tpu as pltpu


# ----------------------------------------------------------------------------
# Freqs / table construction (host-side, done ONCE at module init)
# ----------------------------------------------------------------------------
def get_axial_freqs(n_frames, grid_h, grid_w, rope_dim, max_freq=256.0):
    """Equivalent of RotaryEmbedding(dim=rope_dim, freqs_for='pixel',
    max_freq=max_freq).get_axial_freqs(n_frames, grid_h, grid_w)."""
    dim_half = rope_dim // 2
    base = jnp.linspace(1.0, max_freq / 2.0, dim_half, dtype=jnp.float32) * jnp.pi

    def axis_freqs(length):
        pos = jnp.linspace(-1.0, 1.0, length, dtype=jnp.float32)
        f = pos[:, None] * base[None, :]            # (L, dim_half)
        return jnp.repeat(f, 2, axis=-1)            # (L, 2*dim_half) interleaved

    ff = axis_freqs(n_frames)
    fh = axis_freqs(grid_h)
    fw = axis_freqs(grid_w)
    per = ff.shape[-1]
    ff_b = jnp.broadcast_to(ff[:, None, None, :], (n_frames, grid_h, grid_w, per))
    fh_b = jnp.broadcast_to(fh[None, :, None, :], (n_frames, grid_h, grid_w, per))
    fw_b = jnp.broadcast_to(fw[None, None, :, :], (n_frames, grid_h, grid_w, per))
    # (n_frames, p+1, p+1, 3 * 2 * (rope_dim // 2))
    return jnp.concatenate([ff_b, fh_b, fw_b], axis=-1)


def token_freqs(freqs_axial, frame_start, n_frames_used, p):
    """Gather per-token freq rows: p*p video tokens (row-major grid) then the
    audio token at grid position (p, p).  Returns (n_frames_used*(p*p+1), rot)."""
    rows = jnp.concatenate([jnp.arange(p * p) // p, jnp.array([p])])
    cols = jnp.concatenate([jnp.arange(p * p) % p, jnp.array([p])])
    fa = freqs_axial[frame_start:frame_start + n_frames_used]   # (nf, p+1, p+1, rot)
    ft = fa[:, rows, cols, :]                                   # (nf, m, rot)
    return ft.reshape(n_frames_used * (p * p + 1), -1)


def make_cos_sin_tables(ft, d):
    """(S, rot) freqs -> three f32 (S, d) tables:
         cos   : cos(f) on the rotated channels, 1 past `rot`
         sin_e : -sin(f) on even lanes (< rot), 0 elsewhere  (multiplies x[i+1])
         sin_o : +sin(f) on odd  lanes (< rot), 0 elsewhere  (multiplies x[i-1])
    so the kernel's interleaved-pair rotate_half needs NO parity select."""
    S, rot = ft.shape
    even = (jnp.arange(rot) % 2 == 0)[None, :]
    s = jnp.sin(ft)
    pad1 = jnp.ones((S, d - rot), jnp.float32)
    pad0 = jnp.zeros((S, d - rot), jnp.float32)
    cosf = jnp.concatenate([jnp.cos(ft), pad1], axis=-1)
    sin_e = jnp.concatenate([jnp.where(even, -s, 0.0), pad0], axis=-1)
    sin_o = jnp.concatenate([jnp.where(even, 0.0, s), pad0], axis=-1)
    return cosf, sin_e, sin_o


# ----------------------------------------------------------------------------
# VMEM accounting / tile selection
# ----------------------------------------------------------------------------
def _vmem_limit_bytes():
    """Scoped-VMEM limit to request: ~7/8 of physical, clamped to [32, 112] MiB
    (v5e/v6e: 128 MiB physical -> 112 MiB; v7x: 64 MiB -> 56 MiB)."""
    try:
        phys = int(pltpu.get_tpu_info().vmem_capacity_bytes)
    except Exception:
        phys = 64 * 1024 * 1024                     # conservative (v7x-sized)
    return max(32 * 1024 * 1024, min(phys - phys // 8, 112 * 1024 * 1024))


def _fused_step_bytes(bt, Sq, Sk, d, itemsize):
    io = 4 * bt * (Sq + Sk) * d * itemsize          # q+k, in AND out, double-buffered
    tables = 2 * 3 * Sk * d * 4                     # 3 shared f32 tables, double-buffered
    temps = 4 * bt * max(Sq, Sk) * d * 4            # in-kernel f32 working set (estimate)
    return io + tables + temps


def _choose_bh_tile(BH, Sq, Sk, d, itemsize, budget):
    """Largest divisor of BH that fits `budget`, preferring an even grid of
    >= 4 steps (feeds both v7x TensorCores and amortizes pipeline warmup);
    returns None if even bt=1 does not fit (caller uses the frame-tiled path)."""
    divisors = [t for t in range(1, BH + 1) if BH % t == 0]
    fits = [t for t in divisors if _fused_step_bytes(t, Sq, Sk, d, itemsize) <= budget]
    if not fits:
        return None
    steps = lambda t: BH // t
    for pred in (lambda t: steps(t) >= 4 and steps(t) % 2 == 0,
                 lambda t: steps(t) >= 2):
        pref = [t for t in fits if pred(t)]
        if pref:
            return max(pref)
    return max(fits)


def _choose_frame_bh_tile(BH, m, d, itemsize, budget):
    def step_bytes(bt):
        return 4 * bt * m * d * itemsize + 2 * 3 * m * d * 4 + 4 * bt * m * d * 4
    divisors = [t for t in range(1, BH + 1) if BH % t == 0]
    fits = [t for t in divisors if step_bytes(t) <= budget]
    return max(fits) if fits else 1


# ----------------------------------------------------------------------------
# Pallas kernels
# ----------------------------------------------------------------------------
def _rope_block(x, cos, sin_e, sin_o, out_dtype):
    """out = x*cos + x_next*sin_e + x_prev*sin_o along the lane (last) axis.
    Tables are (S, d) f32 and broadcast over the leading batch-head axis."""
    xf = x.astype(jnp.float32)                       # (bt, S, d)
    d = xf.shape[-1]
    lane = xf.ndim - 1
    nxt = pltpu.roll(xf, d - 1, lane)                # nxt[..., i] = x[..., (i+1)%d]  (XLU)
    prv = pltpu.roll(xf, 1, lane)                    # prv[..., i] = x[..., (i-1)%d]  (XLU)
    out = xf * cos[None] + nxt * sin_e[None] + prv * sin_o[None]
    return out.astype(out_dtype)


def _fused_rope_kernel(q_ref, k_ref, cos_ref, se_ref, so_ref, qo_ref, ko_ref):
    sq = q_ref.shape[1]
    sk = k_ref.shape[1]
    off = sk - sq                                    # q uses the LAST sq rows of the k tables
    ko_ref[...] = _rope_block(k_ref[...], cos_ref[...], se_ref[...], so_ref[...],
                              ko_ref.dtype)
    qo_ref[...] = _rope_block(q_ref[...], cos_ref[off:, :], se_ref[off:, :],
                              so_ref[off:, :], qo_ref.dtype)


def _single_rope_kernel(x_ref, cos_ref, se_ref, so_ref, o_ref):
    o_ref[...] = _rope_block(x_ref[...], cos_ref[...], se_ref[...], so_ref[...],
                             o_ref.dtype)


# ----------------------------------------------------------------------------
# pallas_call wrappers
# ----------------------------------------------------------------------------
def _fused_call(qf, kf, cos_k, se_k, so_k, bt, vmem_limit):
    BH, Sq, d = qf.shape
    Sk = kf.shape[1]
    return pl.pallas_call(
        _fused_rope_kernel,
        out_shape=(jax.ShapeDtypeStruct((BH, Sq, d), qf.dtype),
                   jax.ShapeDtypeStruct((BH, Sk, d), kf.dtype)),
        grid_spec=pltpu.PrefetchScalarGridSpec(
            num_scalar_prefetch=0,
            grid=(BH // bt,),
            in_specs=[
                pl.BlockSpec((bt, Sq, d), lambda i: (i, 0, 0)),   # q
                pl.BlockSpec((bt, Sk, d), lambda i: (i, 0, 0)),   # k
                pl.BlockSpec((Sk, d), lambda i: (0, 0)),          # cos   (constant)
                pl.BlockSpec((Sk, d), lambda i: (0, 0)),          # sin_e (constant)
                pl.BlockSpec((Sk, d), lambda i: (0, 0)),          # sin_o (constant)
            ],
            out_specs=[
                pl.BlockSpec((bt, Sq, d), lambda i: (i, 0, 0)),
                pl.BlockSpec((bt, Sk, d), lambda i: (i, 0, 0)),
            ],
        ),
        compiler_params=pltpu.CompilerParams(
            dimension_semantics=("parallel",),
            vmem_limit_bytes=vmem_limit),
        # RoPE is applied in place: alias q->q_out, k->k_out.
        input_output_aliases={0: 0, 1: 1},
    )(qf, kf, cos_k, se_k, so_k)


def _frame_tiled_call(x4, cos3, se3, so3, bt, vmem_limit):
    """Fallback for sequences too long for a single (bt, S, d) block: grid over
    (batch-head tiles, frames); the frame dim is squeezed so the kernel still
    sees rank-3 (bt, m, d) blocks."""
    BH, nf, m, d = x4.shape
    x_in_spec = pl.BlockSpec((bt, None, m, d), lambda i, j: (i, j, 0, 0))
    x_out_spec = pl.BlockSpec((bt, None, m, d), lambda i, j: (i, j, 0, 0))
    t_spec = pl.BlockSpec((None, m, d), lambda i, j: (j, 0, 0))
    return pl.pallas_call(
        _single_rope_kernel,
        out_shape=jax.ShapeDtypeStruct(x4.shape, x4.dtype),
        grid_spec=pltpu.PrefetchScalarGridSpec(
            num_scalar_prefetch=0,
            grid=(BH // bt, nf),
            in_specs=[x_in_spec, t_spec, t_spec, t_spec],
            out_specs=x_out_spec,
        ),
        compiler_params=pltpu.CompilerParams(
            dimension_semantics=("parallel", "parallel"),
            vmem_limit_bytes=vmem_limit),
        input_output_aliases={0: 0},
    )(x4, cos3, se3, so3)


# ----------------------------------------------------------------------------
# Forward dispatcher
# ----------------------------------------------------------------------------
def frame_rope_pallas(q, k, cos_full, sin_e_full, sin_o_full, *, m,
                      force_fallback=False):
    """FrameRoPE.forward(q, k).  cos/sin tables are the precomputed f32
    (n_frames*m, d) buffers (frame 0 first); k uses frames [0, n) and q the
    last n_q of those, exactly as in the reference module."""
    b, h, Sq, d = q.shape
    Sk = k.shape[2]
    BH = b * h
    n, n_q = Sk // m, Sq // m

    vmem_limit = _vmem_limit_bytes()
    qf = q.reshape(BH, Sq, d)
    kf = k.reshape(BH, Sk, d)

    bt = None if force_fallback else _choose_bh_tile(
        BH, Sq, Sk, d, q.dtype.itemsize, vmem_limit)

    if bt is not None:
        # Primary fused path: 3 shared tables; q reads their tail slice in-kernel.
        cos_k, se_k, so_k = (t[:Sk] for t in (cos_full, sin_e_full, sin_o_full))
        q_out, k_out = _fused_call(qf, kf, cos_k, se_k, so_k, bt, vmem_limit)
    else:
        # Long-sequence / tiny-VMEM fallback: frame-tiled grid, q and k in
        # separate calls so each tiles its own frame count independently.
        def tab3(t, lo, nf):
            return t[lo * m:(lo + nf) * m].reshape(nf, m, d)

        bt_f = _choose_frame_bh_tile(BH, m, d, q.dtype.itemsize, vmem_limit)
        k_out = _frame_tiled_call(
            kf.reshape(BH, n, m, d),
            tab3(cos_full, 0, n), tab3(sin_e_full, 0, n), tab3(sin_o_full, 0, n),
            bt_f, vmem_limit).reshape(BH, Sk, d)
        q_out = _frame_tiled_call(
            qf.reshape(BH, n_q, m, d),
            tab3(cos_full, n - n_q, n_q), tab3(sin_e_full, n - n_q, n_q),
            tab3(sin_o_full, n - n_q, n_q),
            bt_f, vmem_limit).reshape(BH, Sq, d)

    return q_out.reshape(b, h, Sq, d), k_out.reshape(b, h, Sk, d)


class FrameRoPE:
    """JAX/Pallas port of the PyTorch FrameRoPE module.  Construct once (this
    precomputes the axial freqs and the kernel cos/sin tables, mirroring the
    persistent `freqs` buffer), then call like the nn.Module forward.

    NOTE: the kernel updates q and k in place (input_output_aliases); callers
    should donate q/k at their jit boundary (jax.jit donate_argnums) so XLA
    does not insert a defensive HBM copy of both tensors."""

    def __init__(self, d_model, n_heads, n_frames, sample_size,
                 tokens_per_frame=None, max_freq=256.0):
        self.p = sample_size
        self.m = tokens_per_frame if tokens_per_frame is not None else self.p ** 2 + 1
        assert self.m == self.p * self.p + 1, "tokens_per_frame must be p*p + 1"
        self.d = d_model // n_heads
        rope_dim = self.d // 6
        # (n_frames, p+1, p+1, rot) — same as the torch persistent buffer.
        self.freqs = get_axial_freqs(n_frames, self.p + 1, self.p + 1,
                                     rope_dim, max_freq)
        # Per-token cos / parity-masked sin tables for ALL frames, f32, (n_frames*m, d).
        ft = token_freqs(self.freqs, 0, n_frames, self.p)
        self.cos, self.sin_e, self.sin_o = make_cos_sin_tables(ft, self.d)

    def __call__(self, q, k, offset=0, force_fallback=False):
        del offset   # accepted but unused, as in the reference module
        return frame_rope_pallas(q, k, self.cos, self.sin_e, self.sin_o,
                                 m=self.m, force_fallback=force_fallback)


# ----------------------------------------------------------------------------
# Pure-JAX reference (direct port of the PyTorch forward, for verification)
# ----------------------------------------------------------------------------
def _rotate_half_ref(x):
    x1 = x[..., 0::2]
    x2 = x[..., 1::2]
    return jnp.stack([-x2, x1], axis=-1).reshape(x.shape)


def _apply_rotary_emb_ref(freqs, t):
    rot = freqs.shape[-1]
    t_rot, t_rest = t[..., :rot], t[..., rot:]
    out = t_rot * jnp.cos(freqs) + _rotate_half_ref(t_rot) * jnp.sin(freqs)
    return jnp.concatenate([out, t_rest], axis=-1)


def frame_rope_ref(q, k, freqs_axial, m, p):
    b, h, Sk, d = k.shape
    n = Sk // m
    n_q = q.shape[2] // m
    p2 = p * p

    def one(x, nf, f_start):
        xf = x.reshape(b, h, nf, m, d)
        video = xf[:, :, :, :p2].reshape(b, h, nf, p, p, d)
        audio = xf[:, :, :, m - 1]
        grid = jnp.zeros((b, h, nf, p + 1, p + 1, d), x.dtype)
        grid = grid.at[:, :, :, :p, :p].set(video)
        grid = grid.at[:, :, :, p, p].set(audio)
        out = _apply_rotary_emb_ref(freqs_axial[f_start:f_start + nf], grid)
        video_o = out[:, :, :, :p, :p].reshape(b, h, nf, p2, d)
        audio_o = out[:, :, :, p, p][:, :, :, None, :]
        return jnp.concatenate([video_o, audio_o], axis=3).reshape(b, h, nf * m, d)

    return one(q, n_q, n - n_q), one(k, n, 0)


# ----------------------------------------------------------------------------
# Demo / smoke test
# ----------------------------------------------------------------------------
if __name__ == "__main__":
    # config (synthetic, deterministic)
    d_model = 256
    n_heads = 2
    n_frames = 4
    p = 4                               # sample_size
    dim_head = d_model // n_heads       # 128
    m = p * p + 1                       # tokens_per_frame = 17

    batch = 2
    n = n_frames                        # frames present in k
    n_q = 2                             # frames present in q

    rope = FrameRoPE(d_model, n_heads, n_frames, p)

    key = jax.random.PRNGKey(0)
    kq, kk = jax.random.split(key)
    q = jax.random.normal(kq, (batch, n_heads, n_q * m, dim_head), jnp.float32)
    k = jax.random.normal(kk, (batch, n_heads, n * m, dim_head), jnp.float32)

    # reference (uses the same persistent freqs buffer)
    q_ref_out, k_ref_out = frame_rope_ref(q, k, rope.freqs, m, p)

    # Primary fused path.  q/k copies are DONATED at the jit boundary so the
    # in-kernel aliasing does not force a defensive HBM copy (perf item 9).
    fwd = jax.jit(lambda a, b: rope(a, b), donate_argnums=(0, 1))
    q_out, k_out = fwd(q + 0.0, k + 0.0)
    jax.block_until_ready((q_out, k_out))

    assert q_out.shape == (batch, n_heads, n_q * m, dim_head)
    assert k_out.shape == (batch, n_heads, n * m, dim_head)
    assert jnp.allclose(q_out, q_ref_out, atol=1e-4, rtol=1e-4), "q mismatch (fused)"
    assert jnp.allclose(k_out, k_ref_out, atol=1e-4, rtol=1e-4), "k mismatch (fused)"

    # Long-sequence fallback path (frame-tiled grid), forced so it is exercised
    # and verified too.  (Not donated: q/k stay valid.)
    q_out2, k_out2 = rope(q, k, force_fallback=True)
    jax.block_until_ready((q_out2, k_out2))
    assert jnp.allclose(q_out2, q_ref_out, atol=1e-4, rtol=1e-4), "q mismatch (fallback)"
    assert jnp.allclose(k_out2, k_ref_out, atol=1e-4, rtol=1e-4), "k mismatch (fallback)"

    print("KERNEL_OK")
</pallas_src>

<mosaic_0001>
module attributes {stable_mosaic.version = 11 : i64} {
  func.func @_fused_rope_kernel(%arg0: i32, %arg1: memref<1x34x128xf32, #tpu.memory_space<vmem>>, %arg2: memref<1x68x128xf32, #tpu.memory_space<vmem>>, %arg3: memref<68x128xf32, #tpu.memory_space<vmem>>, %arg4: memref<68x128xf32, #tpu.memory_space<vmem>>, %arg5: memref<68x128xf32, #tpu.memory_space<vmem>>, %arg6: memref<1x34x128xf32, #tpu.memory_space<vmem>>, %arg7: memref<1x68x128xf32, #tpu.memory_space<vmem>>) attributes {dimension_semantics = [#tpu.dimension_semantics<parallel>], iteration_bounds = array<i64: 4>, scalar_prefetch = 0 : i64, scratch_operands = 0 : i64, tpu.core_type = #tpu.core_type<tc>, window_params = [{transform_indices = @transform_0, window_bounds = array<i64: 1, 34, 128>}, {transform_indices = @transform_1, window_bounds = array<i64: 1, 68, 128>}, {pipeline_mode = #tpu.pipeline_mode<synchronous>, transform_indices = @transform_2, window_bounds = array<i64: 68, 128>}, {pipeline_mode = #tpu.pipeline_mode<synchronous>, transform_indices = @transform_3, window_bounds = array<i64: 68, 128>}, {pipeline_mode = #tpu.pipeline_mode<synchronous>, transform_indices = @transform_4, window_bounds = array<i64: 68, 128>}, {transform_indices = @transform_5, window_bounds = array<i64: 1, 34, 128>}, {transform_indices = @transform_6, window_bounds = array<i64: 1, 68, 128>}]} {
    %c0 = arith.constant 0 : index
    %c0_0 = arith.constant 0 : index
    %c0_1 = arith.constant 0 : index
    %0 = vector.load %arg2[%c0, %c0_0, %c0_1] : memref<1x68x128xf32, #tpu.memory_space<vmem>>, vector<1x68x128xf32>
    %c0_2 = arith.constant 0 : index
    %c0_3 = arith.constant 0 : index
    %1 = vector.load %arg3[%c0_2, %c0_3] : memref<68x128xf32, #tpu.memory_space<vmem>>, vector<68x128xf32>
    %c0_4 = arith.constant 0 : index
    %c0_5 = arith.constant 0 : index
    %2 = vector.load %arg4[%c0_4, %c0_5] : memref<68x128xf32, #tpu.memory_space<vmem>>, vector<68x128xf32>
    %c0_6 = arith.constant 0 : index
    %c0_7 = arith.constant 0 : index
    %3 = vector.load %arg5[%c0_6, %c0_7] : memref<68x128xf32, #tpu.memory_space<vmem>>, vector<68x128xf32>
    %c127_i32 = arith.constant 127 : i32
    %4 = tpu.dynamic_rotate %0 by %c127_i32 dim 2 : vector<1x68x128xf32>, i32 -> vector<1x68x128xf32>
    %c1_i32 = arith.constant 1 : i32
    %5 = tpu.dynamic_rotate %0 by %c1_i32 dim 2 : vector<1x68x128xf32>, i32 -> vector<1x68x128xf32>
    %6 = vector.shape_cast %1 : vector<68x128xf32> to vector<1x68x128xf32>
    %7 = arith.mulf %0, %6 : vector<1x68x128xf32>
    %8 = vector.shape_cast %2 : vector<68x128xf32> to vector<1x68x128xf32>
    %9 = arith.mulf %4, %8 : vector<1x68x128xf32>
    %10 = arith.addf %7, %9 : vector<1x68x128xf32>
    %11 = vector.shape_cast %3 : vector<68x128xf32> to vector<1x68x128xf32>
    %12 = arith.mulf %5, %11 : vector<1x68x128xf32>
    %13 = arith.addf %10, %12 : vector<1x68x128xf32>
    %c0_8 = arith.constant 0 : index
    %c0_9 = arith.constant 0 : index
    %c0_10 = arith.constant 0 : index
    %14 = vector.load %arg7[%c0_8, %c0_9, %c0_10] : memref<1x68x128xf32, #tpu.memory_space<vmem>>, vector<1x68x128xf32>
    tpu.vector_store %arg7[%c0_8, %c0_9, %c0_10], %13 {strides = array<i32>} : memref<1x68x128xf32, #tpu.memory_space<vmem>>, vector<1x68x128xf32>,
    %c0_11 = arith.constant 0 : index
    %c0_12 = arith.constant 0 : index
    %c0_13 = arith.constant 0 : index
    %15 = vector.load %arg1[%c0_11, %c0_12, %c0_13] : memref<1x34x128xf32, #tpu.memory_space<vmem>>, vector<1x34x128xf32>
    %c34 = arith.constant 34 : index
    %c0_14 = arith.constant 0 : index
    %16 = vector.load %arg3[%c34, %c0_14] : memref<68x128xf32, #tpu.memory_space<vmem>>, vector<34x128xf32>
    %c34_15 = arith.constant 34 : index
    %c0_16 = arith.constant 0 : index
    %17 = vector.load %arg4[%c34_15, %c0_16] : memref<68x128xf32, #tpu.memory_space<vmem>>, vector<34x128xf32>
    %c34_17 = arith.constant 34 : index
    %c0_18 = arith.constant 0 : index
    %18 = vector.load %arg5[%c34_17, %c0_18] : memref<68x128xf32, #tpu.memory_space<vmem>>, vector<34x128xf32>
    %c127_i32_19 = arith.constant 127 : i32
    %19 = tpu.dynamic_rotate %15 by %c127_i32_19 dim 2 : vector<1x34x128xf32>, i32 -> vector<1x34x128xf32>
    %c1_i32_20 = arith.constant 1 : i32
    %20 = tpu.dynamic_rotate %15 by %c1_i32_20 dim 2 : vector<1x34x128xf32>, i32 -> vector<1x34x128xf32>
    %21 = vector.shape_cast %16 : vector<34x128xf32> to vector<1x34x128xf32>
    %22 = arith.mulf %15, %21 : vector<1x34x128xf32>
    %23 = vector.shape_cast %17 : vector<34x128xf32> to vector<1x34x128xf32>
    %24 = arith.mulf %19, %23 : vector<1x34x128xf32>
    %25 = arith.addf %22, %24 : vector<1x34x128xf32>
    %26 = vector.shape_cast %18 : vector<34x128xf32> to vector<1x34x128xf32>
    %27 = arith.mulf %20, %26 : vector<1x34x128xf32>
    %28 = arith.addf %25, %27 : vector<1x34x128xf32>
    %c0_21 = arith.constant 0 : index
    %c0_22 = arith.constant 0 : index
    %c0_23 = arith.constant 0 : index
    %29 = vector.load %arg6[%c0_21, %c0_22, %c0_23] : memref<1x34x128xf32, #tpu.memory_space<vmem>>, vector<1x34x128xf32>
    tpu.vector_store %arg6[%c0_21, %c0_22, %c0_23], %28 {strides = array<i32>} : memref<1x34x128xf32, #tpu.memory_space<vmem>>, vector<1x34x128xf32>,
    return
  }
  func.func @transform_0(%arg0: i32) -> (i32, i32, i32) {
    %c0_i32 = arith.constant 0 : i32
    %c0_i32_0 = arith.constant 0 : i32
    %c0_i32_1 = arith.constant 0 : i32
    return %arg0, %c0_i32, %c0_i32_0 : i32, i32, i32
  }
  func.func @transform_1(%arg0: i32) -> (i32, i32, i32) {
    %c0_i32 = arith.constant 0 : i32
    %c0_i32_0 = arith.constant 0 : i32
    %c0_i32_1 = arith.constant 0 : i32
    return %arg0, %c0_i32, %c0_i32_0 : i32, i32, i32
  }
  func.func @transform_2(%arg0: i32) -> (i32, i32) {
    %c0_i32 = arith.constant 0 : i32
    %c0_i32_0 = arith.constant 0 : i32
    %c0_i32_1 = arith.constant 0 : i32
    return %c0_i32, %c0_i32_0 : i32, i32
  }
  func.func @transform_3(%arg0: i32) -> (i32, i32) {
    %c0_i32 = arith.constant 0 : i32
    %c0_i32_0 = arith.constant 0 : i32
    %c0_i32_1 = arith.constant 0 : i32
    return %c0_i32, %c0_i32_0 : i32, i32
  }
  func.func @transform_4(%arg0: i32) -> (i32, i32) {
    %c0_i32 = arith.constant 0 : i32
    %c0_i32_0 = arith.constant 0 : i32
    %c0_i32_1 = arith.constant 0 : i32
    return %c0_i32, %c0_i32_0 : i32, i32
  }
  func.func @transform_5(%arg0: i32) -> (i32, i32, i32) {
    %c0_i32 = arith.constant 0 : i32
    %c0_i32_0 = arith.constant 0 : i32
    %c0_i32_1 = arith.constant 0 : i32
    return %arg0, %c0_i32, %c0_i32_0 : i32, i32, i32
  }
  func.func @transform_6(%arg0: i32) -> (i32, i32, i32) {
    %c0_i32 = arith.constant 0 : i32
    %c0_i32_0 = arith.constant 0 : i32
    %c0_i32_1 = arith.constant 0 : i32
    return %arg0, %c0_i32, %c0_i32_0 : i32, i32, i32
  }
}

</mosaic_0001>

<bundles_post_ra>
// kernel: _lambda_.1
= control target key start
LH: loop header
LB: loop body
LE: loop exit
PB: predicated region body
PF: predicated region fallthrough
CT: control target
= control target key end

     0   :  { %s649_s21 = smov 0   ;;  %s919_s0 = inlined_call_operand.vmem [shape: f32[4,34,128], index: 0, kind: input, shape index: {}, may-alias: {0,5}]   ;;  %s920_s1 = inlined_call_operand.vmem [shape: f32[4,68,128], index: 1, kind: input, shape index: {}, may-alias: {1,6}]   ;;  %s921_s2 = inlined_call_operand.vmem [shape: f32[68,128], index: 2, kind: input, shape index: {}]   ;;  %s922_s3 = inlined_call_operand.vmem [shape: f32[68,128], index: 3, kind: input, shape index: {}]   ;;  %s923_s4 = inlined_call_operand.vmem [shape: f32[68,128], index: 4, kind: input, shape index: {}]   ;;  %s924_s5 = inlined_call_operand.vmem [shape: f32[4,34,128], index: 5, kind: output, shape index: {0}, may-alias: {0,5}]   ;;  %s925_s6 = inlined_call_operand.vmem [shape: f32[4,68,128], index: 6, kind: output, shape index: {1}, may-alias: {1,6}]  }
   0x1 LB: > { %s581_s22 = sadd.s32 4294967295, %s610_s21   ;;  %p585_p0 = scmp.ge.s32.totalorder %s610_s21, 1  ;;  %s610_s21 = sphi %s649_s21, %s17_s21  }
   0x2   : > { %p225_p1 = scmp.lt.s32.totalorder %s610_s21, 5 }
   0x4   : > { %p226_p2 = pnand %p585_p0, %p225_p1 }
   0x5   : > { %p265_p3 = scmp.lt.s32.totalorder (!%p226_p2), %s581_s22, 3  ;;  %s612_s27 = smov (!%p226_p2), 127   ;;  %v294_v26 = vld [vmem:[%s921_s2] sm:$0xff] (!%p226_p2)  ;;  %v295_v28 = vld [vmem:[%s921_s2 + $0x8] sm:$0xff] (!%p226_p2)  ;;  %v296_v30 = vld [vmem:[%s921_s2 + $0x10] sm:$0xff] (!%p226_p2) }
   0x6   : > { %229 = sbr.rel (%p226_p2) target bundleno = 190 (0xbe), region = 40  ;;  %s613_s8 = smov (!%p226_p2), 1   ;;  %v303_v27 = vld [vmem:[%s922_s3] sm:$0xff] (!%p226_p2)  ;;  %v304_v29 = vld [vmem:[%s922_s3 + $0x8] sm:$0xff] (!%p226_p2)  ;;  %v305_v33 = vld [vmem:[%s922_s3 + $0x10] sm:$0xff] (!%p226_p2) }
   0x7   : > { %v297_v36 = vld [vmem:[%s921_s2 + $0x18] sm:$0xff] (!%p226_p2)  ;;  %v312_v40 = vld [vmem:[%s923_s4] sm:$0xff] (!%p226_p2)  ;;  %v313_v41 = vld [vmem:[%s923_s4 + $0x8] sm:$0xff] (!%p226_p2) }
   0x8   : > { %v306_v37 = vld [vmem:[%s922_s3 + $0x18] sm:$0xff] (!%p226_p2)  ;;  %v299_v50 = vld [vmem:[%s921_s2 + $0x28] sm:$0xff] (!%p226_p2)  ;;  %v298_v52 = vld [vmem:[%s921_s2 + $0x20] sm:$0xff] (!%p226_p2) }
   0x9   : > { %v308_v51 = vld [vmem:[%s922_s3 + $0x28] sm:$0xff] (!%p226_p2)  ;;  %v307_v55 = vld [vmem:[%s922_s3 + $0x20] sm:$0xff] (!%p226_p2)  ;;  %v314_v56 = vld [vmem:[%s923_s4 + $0x10] sm:$0xff] (!%p226_p2) }
   0xa   : > { %v315_v57 = vld [vmem:[%s923_s4 + $0x18] sm:$0xff] (!%p226_p2) }
   0xd   : > { %s927_s22 = smov (!%p265_p3, %s581_s22), 3 }
   0xe   : > { %s593_s23 = smul.u32 72, %s927_s22 }
   0xf   : > { %s592_s28 = smul.u32 40, %s927_s22 }
  0x10   : > { %s274_s26 = scalar_lea.vmem %s920_s1, %s593_s23  ;;  %s789_s17 = scalar_lea.vmem %s925_s6, %s593_s23 }
  0x11   : > { %v665_v0 = vld [vmem:[%s274_s26 + $0x10] sm:$0xff]  ;;  %v667_v1 = vld [vmem:[%s274_s26] sm:$0xff]  ;;  %v671_v2 = vld [vmem:[%s274_s26 + $0x18] sm:$0xff]  ;;  %s269_s7 = scalar_lea.vmem %s919_s0, %s592_s28 }
  0x12   : > { %325 = vrot.lane.b32.xlu1 %v665_v0, %s612_s27  ;;  %321 = vrot.lane.b32.xlu0 %v667_v1, %s612_s27  ;;  %v673_v3 = vld [vmem:[%s274_s26 + $0x8] sm:$0xff]  ;;  %v679_v5 = vld [vmem:[%s274_s26 + $0x20] sm:$0xff]  ;;  %v357_v34 = vmul.f32 %v294_v26, %v667_v1  ;;  %v359_v42 = vmul.f32 %v296_v30, %v665_v0  ;;  %v360_v44 = vmul.f32 %v297_v36, %v671_v2 }
  0x13   : > { %v677_v4 = vld [vmem:[%s274_s26 + $0x28] sm:$0xff]  ;;  %v684_v6 = vld [vmem:[%s274_s26 + $0x38] sm:$0xff]  ;;  %v686_v7 = vld [vmem:[%s274_s26 + $0x30] sm:$0xff]  ;;  %v358_v38 = vmul.f32 %v295_v28, %v673_v3  ;;  %v361_v63 = vmul.f32 %v298_v52, %v679_v5 }
  0x14   : > { %v695_v8 = vld [vmem:[%s274_s26 + $0x40] sm:$0xf]  ;;  %v701_v10 = vld [vmem:[%s269_s7 + $0x8] sm:$0xff]  ;;  %v703_v11 = vld [vmem:[%s269_s7 + $0x10] sm:$0xff]  ;;  %v362_v62 = vmul.f32 %v299_v50, %v677_v4 }
  0x15   : > { %v697_v9 = vld [vmem:[%s269_s7] sm:$0xff]  ;;  %v707_v12 = vld [vmem:[%s269_s7 + $0x18] sm:$0xff] }
  0x16   : > { %327 = vrot.lane.b32.xlu1 %v671_v2, %s612_s27  ;;  %323 = vrot.lane.b32.xlu0 %v673_v3, %s612_s27  ;;  %v709_v13 = vld [vmem:[%s269_s7 + $0x20] sm:$0x3]  ;;  %s889_s7 = scalar_lea.vmem %s924_s5, %s592_s28 }
  0x1a   : > { %331 = vrot.lane.b32.xlu1 %v677_v4, %s612_s27  ;;  %329 = vrot.lane.b32.xlu0 %v679_v5, %s612_s27 }
  0x1e   : > { %335 = vrot.lane.b32.xlu1 %v684_v6, %s612_s27  ;;  %333 = vrot.lane.b32.xlu0 %v686_v7, %s612_s27 }
  0x22   : > { %337 = vrot.lane.b32.xlu0 %v695_v8, %s612_s27  ;;  %431 = vrot.lane.b32.xlu1 %v697_v9, %s612_s27 }
  0x26   : > { %433 = vrot.lane.b32.xlu0 %v701_v10, %s612_s27  ;;  %435 = vrot.lane.b32.xlu1 %v703_v11, %s612_s27 }
  0x2a   : > { %437 = vrot.lane.b32.xlu0 %v707_v12, %s612_s27  ;;  %439 = vrot.lane.b32.xlu1 %v709_v13, %s612_s27 }
  0x2e   : > { %339 = vrot.lane.b32.xlu0 %v667_v1, %s613_s8  ;;  %341 = vrot.lane.b32.xlu1 %v673_v3, %s613_s8 }
  0x32   : > { %343 = vrot.lane.b32.xlu0 %v665_v0, %s613_s8  ;;  %345 = vrot.lane.b32.xlu1 %v671_v2, %s613_s8  ;;  %v301_v0 = vld [vmem:[%s921_s2 + $0x38] sm:$0xff] }
  0x33   : > { %v364_v28 = vmul.f32 %v301_v0, %v684_v6 }
  0x36   : > { %347 = vrot.lane.b32.xlu0 %v679_v5, %s613_s8  ;;  %349 = vrot.lane.b32.xlu1 %v677_v4, %s613_s8  ;;  %v309_v4 = vld [vmem:[%s922_s3 + $0x30] sm:$0xff] }
  0x3a   : > { %351 = vrot.lane.b32.xlu0 %v686_v7, %s613_s8  ;;  %353 = vrot.lane.b32.xlu1 %v684_v6, %s613_s8  ;;  %v416_v6 = vld [vmem:[%s921_s2 + $0x22] sm:$0xff] }
  0x3e   : > { %355 = vrot.lane.b32.xlu0 %v695_v8, %s613_s8  ;;  %441 = vrot.lane.b32.xlu1 %v697_v9, %s613_s8 }
  0x42   : > { %443 = vrot.lane.b32.xlu0 %v701_v10, %s613_s8  ;;  %445 = vrot.lane.b32.xlu1 %v703_v11, %s613_s8 }
  0x46   : > { %447 = vrot.lane.b32.xlu0 %v707_v12, %s613_s8  ;;  %449 = vrot.lane.b32.xlu1 %v709_v13, %s613_s8 }
  0x84   : > { %v326_v14 = vpop.permute.xlu1 %325  ;;  %v322_v15 = vpop.permute.xlu0 %321 }
  0x85   : > { %v366_v35 = vmul.f32 %v322_v15, %v303_v27  ;;  %v368_v43 = vmul.f32 %v326_v14, %v305_v33  ;;  %v310_v15 = vld [vmem:[%s922_s3 + $0x38] sm:$0xff] }
  0x87   : > { %v375_v48 = vadd.f32 %v366_v35, %v357_v34  ;;  %v377_v60 = vadd.f32 %v368_v43, %v359_v42 }
  0x88   : > { %v328_v16 = vpop.permute.xlu1 %327  ;;  %v324_v17 = vpop.permute.xlu0 %323 }
  0x89   : > { %v367_v39 = vmul.f32 %v324_v17, %v304_v29  ;;  %v369_v45 = vmul.f32 %v328_v16, %v306_v37  ;;  %v300_v16 = vld [vmem:[%s921_s2 + $0x30] sm:$0xff] }
  0x8a   : > { %v363_v30 = vmul.f32 %v300_v16, %v686_v7 }
  0x8b   : > { %v376_v49 = vadd.f32 %v367_v39, %v358_v38  ;;  %v378_v61 = vadd.f32 %v369_v45, %v360_v44  ;;  %v302_v38 = vld [vmem:[%s921_s2 + $0x40] sm:$0xf] }
  0x8c   : > { %v332_v18 = vpop.permute.xlu1 %331  ;;  %v330_v19 = vpop.permute.xlu0 %329  ;;  %v311_v39 = vld [vmem:[%s922_s3 + $0x40] sm:$0xf] }
  0x8d   : > { %v371_v3 = vmul.f32 %v332_v18, %v308_v51  ;;  %v370_v14 = vmul.f32 %v330_v19, %v307_v55  ;;  %v316_v18 = vld [vmem:[%s923_s4 + $0x20] sm:$0xff]  ;;  %v317_v19 = vld [vmem:[%s923_s4 + $0x28] sm:$0xff] }
  0x8f   : > { %v380_v36 = vadd.f32 %v371_v3, %v362_v62  ;;  %v379_v37 = vadd.f32 %v370_v14, %v361_v63  ;;  %v424_v3 = vld [vmem:[%s922_s3 + $0x3a] sm:$0xff]  ;;  %v427_v14 = vld [vmem:[%s923_s4 + $0x2a] sm:$0xff] }
  0x90   : > { %v336_v20 = vpop.permute.xlu1 %335  ;;  %v727_v21 = vpop.permute.xlu0 %333 }
  0x91   : > { %v373_v29 = vmul.f32 %v336_v20, %v310_v15  ;;  %v372_v33 = vmul.f32 %v727_v21, %v309_v4  ;;  %v421_v21 = vld [vmem:[%s922_s3 + $0x22] sm:$0xff]  ;;  %v428_v15 = vld [vmem:[%s923_s4 + $0x32] sm:$0xff] }
  0x93   : > { %v382_v44 = vadd.f32 %v373_v29, %v364_v28  ;;  %v381_v45 = vadd.f32 %v372_v33, %v363_v30 }
  0x94   : > { %v729_v22 = vpop.permute.xlu0 %337  ;;  %v731_v23 = vpop.permute.xlu1 %431 }
  0x95   : > { %v374_v51 = vmul.f32 %v729_v22, %v311_v39  ;;  %v456_v52 = vmul.f32 %v731_v23, %v421_v21  ;;  %v320_v22 = vld [vmem:[%s923_s4 + $0x40] sm:$0xf] }
  0x96   : > { %v426_v23 = vld [vmem:[%s923_s4 + $0x22] sm:$0xff] }
  0x98   : > { %v733_v24 = vpop.permute.xlu0 %433  ;;  %v735_v25 = vpop.permute.xlu1 %435 }
  0x9c   : > { %v752_v31 = vpop.permute.xlu0 %437  ;;  %v754_v32 = vpop.permute.xlu1 %439 }
  0x9d   : > { %v459_v28 = vmul.f32 %v752_v31, %v424_v3 }
  0xa0   : > { %v340_v46 = vpop.permute.xlu0 %339  ;;  %v342_v47 = vpop.permute.xlu1 %341 }
  0xa1   : > { %v384_v53 = vmul.f32 %v340_v46, %v312_v40  ;;  %v385_v54 = vmul.f32 %v342_v47, %v313_v41  ;;  %v318_v40 = vld [vmem:[%s923_s4 + $0x30] sm:$0xff]  ;;  %v319_v41 = vld [vmem:[%s923_s4 + $0x38] sm:$0xff]  ;;  %v365_v46 = vmul.f32 %v302_v38, %v695_v8  ;;  %v451_v47 = vmul.f32 %v416_v6, %v697_v9 }
  0xa2   : > { %v418_v8 = vld [vmem:[%s921_s2 + $0x32] sm:$0xff] }
  0xa3   : > { %v393_v58 = vadd.f32 %v384_v53, %v375_v48  ;;  %v394_v59 = vadd.f32 %v385_v54, %v376_v49  ;;  %v417_v48 = vld [vmem:[%s921_s2 + $0x2a] sm:$0xff]  ;;  %v423_v9 = vld [vmem:[%s922_s3 + $0x32] sm:$0xff]  ;;  %v383_v0 = vadd.f32 %v374_v51, %v365_v46 }
  0xa4   : > { %v344_v1 = vpop.permute.xlu0 %343  ;;  %v346_v2 = vpop.permute.xlu1 %345  ;;  %v422_v53 = vld [vmem:[%s922_s3 + $0x2a] sm:$0xff] }
  0xa5   : > { %402 = vst [vmem:[%s789_s17] sm:$0xff] %v393_v58  ;;  %403 = vst [vmem:[%s789_s17 + $0x8] sm:$0xff] %v394_v59  ;;  %v386_v5 = vmul.f32 %v344_v1, %v314_v56  ;;  %v387_v17 = vmul.f32 %v346_v2, %v315_v57  ;;  %v452_v58 = vmul.f32 %v417_v48, %v701_v10  ;;  %v419_v2 = vld [vmem:[%s921_s2 + $0x3a] sm:$0xff]  ;;  %v420_v10 = vld [vmem:[%s921_s2 + $0x42] sm:$0x3] }
  0xa6   : > { %v457_v59 = vmul.f32 %v733_v24, %v422_v53  ;;  %v461_v1 = vadd.f32 %v456_v52, %v451_v47 }
  0xa7   : > { %v395_v26 = vadd.f32 %v386_v5, %v377_v60  ;;  %v396_v27 = vadd.f32 %v387_v17, %v378_v61  ;;  %v453_v60 = vmul.f32 %v418_v8, %v703_v11  ;;  %v458_v61 = vmul.f32 %v735_v25, %v423_v9  ;;  %v425_v25 = vld [vmem:[%s922_s3 + $0x42] sm:$0x3] }
  0xa8   : > { %v348_v34 = vpop.permute.xlu0 %347  ;;  %v350_v35 = vpop.permute.xlu1 %349  ;;  %v462_v5 = vadd.f32 %v457_v59, %v452_v58  ;;  %v460_v29 = vmul.f32 %v754_v32, %v425_v25 }
  0xa9   : > { %404 = vst [vmem:[%s789_s17 + $0x10] sm:$0xff] %v395_v26  ;;  %405 = vst [vmem:[%s789_s17 + $0x18] sm:$0xff] %v396_v27  ;;  %v388_v7 = vmul.f32 %v348_v34, %v316_v18  ;;  %v389_v20 = vmul.f32 %v350_v35, %v317_v19  ;;  %v463_v17 = vadd.f32 %v458_v61, %v453_v60 }
  0xaa   : > { %v454_v18 = vmul.f32 %v419_v2, %v707_v12  ;;  %v455_v19 = vmul.f32 %v420_v10, %v709_v13  ;;  %v429_v12 = vld [vmem:[%s923_s4 + $0x3a] sm:$0xff]  ;;  %v430_v13 = vld [vmem:[%s923_s4 + $0x42] sm:$0x3] }
  0xab   : > { %v397_v42 = vadd.f32 %v388_v7, %v379_v37  ;;  %v398_v43 = vadd.f32 %v389_v20, %v380_v36 }
  0xac   : > { %v352_v49 = vpop.permute.xlu0 %351  ;;  %v354_v50 = vpop.permute.xlu1 %353  ;;  %v464_v37 = vadd.f32 %v459_v28, %v454_v18  ;;  %v465_v32 = vadd.f32 %v460_v29, %v455_v19 }
  0xad   : > { %406 = vst [vmem:[%s789_s17 + $0x20] sm:$0xff] %v397_v42  ;;  %407 = vst [vmem:[%s789_s17 + $0x28] sm:$0xff] %v398_v43  ;;  %v390_v54 = vmul.f32 %v352_v49, %v318_v40  ;;  %v391_v55 = vmul.f32 %v354_v50, %v319_v41 }
  0xaf   : > { %v399_v56 = vadd.f32 %v390_v54, %v381_v45  ;;  %v400_v57 = vadd.f32 %v391_v55, %v382_v44 }
  0xb0   : > { %v356_v62 = vpop.permute.xlu0 %355  ;;  %v442_v63 = vpop.permute.xlu1 %441 }
  0xb1   : > { %408 = vst [vmem:[%s789_s17 + $0x30] sm:$0xff] %v399_v56  ;;  %409 = vst [vmem:[%s789_s17 + $0x38] sm:$0xff] %v400_v57  ;;  %v392_v11 = vmul.f32 %v356_v62, %v320_v22  ;;  %v466_v24 = vmul.f32 %v442_v63, %v426_v23 }
  0xb3   : > { %v401_v16 = vadd.f32 %v392_v11, %v383_v0  ;;  %v471_v4 = vadd.f32 %v466_v24, %v461_v1 }
  0xb4   : > { %v444_v26 = vpop.permute.xlu0 %443  ;;  %v446_v27 = vpop.permute.xlu1 %445 }
  0xb5   : > { %410 = vst [vmem:[%s789_s17 + $0x40] sm:$0xf] %v401_v16  ;;  %476 = vst [vmem:[%s889_s7] sm:$0xff] %v471_v4  ;;  %v467_v30 = vmul.f32 %v444_v26, %v427_v14  ;;  %v468_v33 = vmul.f32 %v446_v27, %v428_v15 }
  0xb7   : > { %v472_v34 = vadd.f32 %v467_v30, %v462_v5  ;;  %v473_v35 = vadd.f32 %v468_v33, %v463_v17 }
  0xb8   : > { %v448_v36 = vpop.permute.xlu0 %447  ;;  %v450_v31 = vpop.permute.xlu1 %449 }
  0xb9   : > { %477 = vst [vmem:[%s889_s7 + $0x8] sm:$0xff] %v472_v34  ;;  %478 = vst [vmem:[%s889_s7 + $0x10] sm:$0xff] %v473_v35  ;;  %v469_v38 = vmul.f32 %v448_v36, %v429_v12  ;;  %v470_v39 = vmul.f32 %v450_v31, %v430_v13 }
  0xbb   : > { %v474_v6 = vadd.f32 %v469_v38, %v464_v37  ;;  %v475_v7 = vadd.f32 %v470_v39, %v465_v32 }
  0xbd   : > { %479 = vst [vmem:[%s889_s7 + $0x18] sm:$0xff] %v474_v6  ;;  %480 = vst [vmem:[%s889_s7 + $0x20] sm:$0x3] %v475_v7 }
  0xbe PF: > { %s17_s21 = sadd.s32 1, %s610_s21  }
  0xbf   : > { %p14_p4 = scmp.ge.s32.totalorder %s17_s21, 6  }
  0xc1   :  { %16 = sbr.rel (!%p14_p4) target bundleno = 1 (0x1), region = 85 }

</bundles_post_ra>
